<compile_context>
chip_gen: v6e
topology: v6e:2x2x1
jax: 0.10.0
libtpu: 0.0.40
codegen_flags: <defaults>
</compile_context>

<pallas_src>
import functools

import jax
import jax.numpy as jnp
from jax.experimental import pallas as pl
from jax.experimental.pallas import tpu as pltpu

# Lane-padded sizes (multiples of 128).
K1_PAD = 896    # 784 -> 7 * 128
H1_PAD = 128    # 100 -> 128
H2_PAD = 128    # 50  -> 128
OUT_PAD = 128   # 10  -> 128


def _mlp_kernel(x_ref, w1_ref, b1_ref, w2_ref, b2_ref, w3_ref, b3_ref, o_ref):
    # Layer 1: (tb, 896) @ (896, 128) + (1, 128) -> ReLU   (f32 accumulate)
    h1 = jnp.dot(x_ref[...], w1_ref[...], preferred_element_type=jnp.float32)
    h1 = jnp.maximum(h1 + b1_ref[...], 0.0).astype(jnp.bfloat16)
    # Layer 2: (tb, 128) @ (128, 128) + (1, 128) -> ReLU
    h2 = jnp.dot(h1, w2_ref[...], preferred_element_type=jnp.float32)
    h2 = jnp.maximum(h2 + b2_ref[...], 0.0).astype(jnp.bfloat16)
    # Layer 3: (tb, 128) @ (128, 128) + (1, 128), no activation.
    h3 = jnp.dot(h2, w3_ref[...], preferred_element_type=jnp.float32)
    o_ref[...] = (h3 + b3_ref[...]).astype(o_ref.dtype)


def _round_up(n, m):
    return ((n + m - 1) // m) * m


def _pad2d(a, rows, cols):
    """Zero-pad a 2-D f32 array to (rows, cols)."""
    out = jnp.zeros((rows, cols), jnp.float32)
    return out.at[: a.shape[0], : a.shape[1]].set(a.astype(jnp.float32))


@functools.partial(jax.jit, static_argnames=("tile_b",))
def mlp_forward(x, w1, b1, w2, b2, w3, b3, tile_b=512):
    """x: (B, 28, 28) / (B, 1, 28, 28) / (B, 784). Returns squeezed (B, 10).

    Weights are stored as (in_features, out_features) so the kernel computes
    y = x @ W + b (PyTorch nn.Linear stores (out, in); pre-transpose if
    importing torch params).
    """
    # Glue: x.view(-1, 28**2)
    x2 = x.reshape(-1, 28 * 28).astype(jnp.float32)
    B = x2.shape[0]

    # Batch tile: multiple of 8 (sublane), capped at tile_b; pad B up to it.
    tb = min(tile_b, _round_up(B, 8))
    b_pad = _round_up(B, tb)

    # Pad x to (b_pad, 896) and cast to bf16 (MXU-native input dtype).
    xp = jnp.zeros((b_pad, K1_PAD), jnp.float32)
    xp = xp.at[:B, : 28 * 28].set(x2).astype(jnp.bfloat16)

    # Zero-pad weights to lane-aligned tiles; bf16 inputs, f32 biases.
    w1p = _pad2d(w1, K1_PAD, H1_PAD).astype(jnp.bfloat16)
    w2p = _pad2d(w2, H1_PAD, H2_PAD).astype(jnp.bfloat16)
    w3p = _pad2d(w3, H2_PAD, OUT_PAD).astype(jnp.bfloat16)
    b1p = _pad2d(b1.reshape(1, -1), 1, H1_PAD)
    b2p = _pad2d(b2.reshape(1, -1), 1, H2_PAD)
    b3p = _pad2d(b3.reshape(1, -1), 1, OUT_PAD)

    grid = (b_pad // tb,)
    const = lambda shape: pl.BlockSpec(shape, lambda i: (0, 0))

    out = pl.pallas_call(
        _mlp_kernel,
        out_shape=jax.ShapeDtypeStruct((b_pad, OUT_PAD), jnp.float32),
        grid=grid,
        in_specs=[
            pl.BlockSpec((tb, K1_PAD), lambda i: (i, 0)),   # x: tiled over batch
            const((K1_PAD, H1_PAD)), const((1, H1_PAD)),    # W1, b1 (resident)
            const((H1_PAD, H2_PAD)), const((1, H2_PAD)),    # W2, b2 (resident)
            const((H2_PAD, OUT_PAD)), const((1, OUT_PAD)),  # W3, b3 (resident)
        ],
        out_specs=pl.BlockSpec((tb, OUT_PAD), lambda i: (i, 0)),
        compiler_params=pltpu.CompilerParams(
            dimension_semantics=("parallel",),   # megacore sharding on v7x
            vmem_limit_bytes=48 << 20,           # safe under 64 MiB (v7x)
        ),
    )(xp, w1p, b1p, w2p, b2p, w3p, b3p)

    # Drop batch padding and lane padding; match torch's x.squeeze().
    return jnp.squeeze(out[:B, :10])


def init_params(key):
    """Deterministic init mimicking nn.Linear's U(-1/sqrt(fan_in), 1/sqrt(fan_in))."""
    ks = jax.random.split(key, 6)

    def linear(kw, kb, fan_in, fan_out):
        bound = 1.0 / jnp.sqrt(fan_in)
        # stored as (in, out) so kernel does x @ W
        w = jax.random.uniform(kw, (fan_in, fan_out), jnp.float32, -bound, bound)
        b = jax.random.uniform(kb, (fan_out,), jnp.float32, -bound, bound)
        return w, b

    w1, b1 = linear(ks[0], ks[1], 784, 100)
    w2, b2 = linear(ks[2], ks[3], 100, 50)
    w3, b3 = linear(ks[4], ks[5], 50, 10)
    return w1, b1, w2, b2, w3, b3


if __name__ == "__main__":
    key = jax.random.PRNGKey(0)
    pkey, xkey = jax.random.split(key)
    w1, b1, w2, b2, w3, b3 = init_params(pkey)

    # Small MNIST-like batch: (B, 28, 28). (Real perf requires B >= ~256.)
    x = jax.random.normal(xkey, (2, 28, 28), jnp.float32)

    y = mlp_forward(x, w1, b1, w2, b2, w3, b3)
    y = jax.block_until_ready(y)

    # Reference in plain f32 JAX (same math). Kernel uses bf16 MXU inputs with
    # f32 accumulation, so compare with a loosened tolerance.
    def ref(x):
        h = x.reshape(-1, 784)
        h = jnp.maximum(h @ w1 + b1, 0.0)
        h = jnp.maximum(h @ w2 + b2, 0.0)
        return jnp.squeeze(h @ w3 + b3)

    assert y.shape == (2, 10)
    assert jnp.allclose(y, ref(x), atol=3e-2, rtol=3e-2)
    print("KERNEL_OK")
</pallas_src>

<mosaic_0001>
module attributes {stable_mosaic.version = 11 : i64} {
  func.func @_mlp_kernel(%arg0: i32, %arg1: memref<8x896xbf16, #tpu.memory_space<vmem>>, %arg2: memref<896x128xbf16, #tpu.memory_space<vmem>>, %arg3: memref<1x128xf32, #tpu.memory_space<vmem>>, %arg4: memref<128x128xbf16, #tpu.memory_space<vmem>>, %arg5: memref<1x128xf32, #tpu.memory_space<vmem>>, %arg6: memref<128x128xbf16, #tpu.memory_space<vmem>>, %arg7: memref<1x128xf32, #tpu.memory_space<vmem>>, %arg8: memref<8x128xf32, #tpu.memory_space<vmem>>) attributes {dimension_semantics = [#tpu.dimension_semantics<parallel>], iteration_bounds = array<i64: 1>, scalar_prefetch = 0 : i64, scratch_operands = 0 : i64, tpu.core_type = #tpu.core_type<tc>, window_params = [{transform_indices = @transform_0, window_bounds = array<i64: 8, 896>}, {pipeline_mode = #tpu.pipeline_mode<synchronous>, transform_indices = @transform_1, window_bounds = array<i64: 896, 128>}, {pipeline_mode = #tpu.pipeline_mode<synchronous>, transform_indices = @transform_2, window_bounds = array<i64: 1, 128>}, {pipeline_mode = #tpu.pipeline_mode<synchronous>, transform_indices = @transform_3, window_bounds = array<i64: 128, 128>}, {pipeline_mode = #tpu.pipeline_mode<synchronous>, transform_indices = @transform_4, window_bounds = array<i64: 1, 128>}, {pipeline_mode = #tpu.pipeline_mode<synchronous>, transform_indices = @transform_5, window_bounds = array<i64: 128, 128>}, {pipeline_mode = #tpu.pipeline_mode<synchronous>, transform_indices = @transform_6, window_bounds = array<i64: 1, 128>}, {transform_indices = @transform_7, window_bounds = array<i64: 8, 128>}]} {
    %c0 = arith.constant 0 : index
    %c0_0 = arith.constant 0 : index
    %0 = vector.load %arg1[%c0, %c0_0] : memref<8x896xbf16, #tpu.memory_space<vmem>>, vector<8x896xbf16>
    %c0_1 = arith.constant 0 : index
    %c0_2 = arith.constant 0 : index
    %1 = vector.load %arg2[%c0_1, %c0_2] : memref<896x128xbf16, #tpu.memory_space<vmem>>, vector<896x128xbf16>
    %cst = arith.constant dense<0.000000e+00> : vector<8x128xf32>
    %2 = tpu.matmul %0, %1, %cst {dimension_numbers = #tpu.dot_dimension_numbers<[1], [0], [0], [1], [0, 0, 1, 1], [], []>} : vector<8x896xbf16>, vector<896x128xbf16>, vector<8x128xf32> -> vector<8x128xf32>
    %c0_3 = arith.constant 0 : index
    %c0_4 = arith.constant 0 : index
    %3 = vector.load %arg3[%c0_3, %c0_4] : memref<1x128xf32, #tpu.memory_space<vmem>>, vector<1x128xf32>
    %4 = vector.broadcast %3 : vector<1x128xf32> to vector<8x128xf32>
    %5 = arith.addf %2, %4 : vector<8x128xf32>
    %cst_5 = arith.constant 0.000000e+00 : f32
    %6 = vector.broadcast %cst_5 : f32 to vector<8x128xf32>
    %7 = arith.maximumf %5, %6 : vector<8x128xf32>
    %8 = arith.truncf %7 : vector<8x128xf32> to vector<8x128xbf16>
    %c0_6 = arith.constant 0 : index
    %c0_7 = arith.constant 0 : index
    %9 = vector.load %arg4[%c0_6, %c0_7] : memref<128x128xbf16, #tpu.memory_space<vmem>>, vector<128x128xbf16>
    %cst_8 = arith.constant dense<0.000000e+00> : vector<8x128xf32>
    %10 = tpu.matmul %8, %9, %cst_8 {dimension_numbers = #tpu.dot_dimension_numbers<[1], [0], [0], [1], [0, 0, 1, 1], [], []>} : vector<8x128xbf16>, vector<128x128xbf16>, vector<8x128xf32> -> vector<8x128xf32>
    %c0_9 = arith.constant 0 : index
    %c0_10 = arith.constant 0 : index
    %11 = vector.load %arg5[%c0_9, %c0_10] : memref<1x128xf32, #tpu.memory_space<vmem>>, vector<1x128xf32>
    %12 = vector.broadcast %11 : vector<1x128xf32> to vector<8x128xf32>
    %13 = arith.addf %10, %12 : vector<8x128xf32>
    %cst_11 = arith.constant 0.000000e+00 : f32
    %14 = vector.broadcast %cst_11 : f32 to vector<8x128xf32>
    %15 = arith.maximumf %13, %14 : vector<8x128xf32>
    %16 = arith.truncf %15 : vector<8x128xf32> to vector<8x128xbf16>
    %c0_12 = arith.constant 0 : index
    %c0_13 = arith.constant 0 : index
    %17 = vector.load %arg6[%c0_12, %c0_13] : memref<128x128xbf16, #tpu.memory_space<vmem>>, vector<128x128xbf16>
    %cst_14 = arith.constant dense<0.000000e+00> : vector<8x128xf32>
    %18 = tpu.matmul %16, %17, %cst_14 {dimension_numbers = #tpu.dot_dimension_numbers<[1], [0], [0], [1], [0, 0, 1, 1], [], []>} : vector<8x128xbf16>, vector<128x128xbf16>, vector<8x128xf32> -> vector<8x128xf32>
    %c0_15 = arith.constant 0 : index
    %c0_16 = arith.constant 0 : index
    %19 = vector.load %arg7[%c0_15, %c0_16] : memref<1x128xf32, #tpu.memory_space<vmem>>, vector<1x128xf32>
    %20 = vector.broadcast %19 : vector<1x128xf32> to vector<8x128xf32>
    %21 = arith.addf %18, %20 : vector<8x128xf32>
    %c0_17 = arith.constant 0 : index
    %c0_18 = arith.constant 0 : index
    %22 = vector.load %arg8[%c0_17, %c0_18] : memref<8x128xf32, #tpu.memory_space<vmem>>, vector<8x128xf32>
    tpu.vector_store %arg8[%c0_17, %c0_18], %21 {strides = array<i32>} : memref<8x128xf32, #tpu.memory_space<vmem>>, vector<8x128xf32>,
    return
  }
  func.func @transform_0(%arg0: i32) -> (i32, i32) {
    %c0_i32 = arith.constant 0 : i32
    %c0_i32_0 = arith.constant 0 : i32
    return %arg0, %c0_i32 : i32, i32
  }
  func.func @transform_1(%arg0: i32) -> (i32, i32) {
    %c0_i32 = arith.constant 0 : i32
    %c0_i32_0 = arith.constant 0 : i32
    %c0_i32_1 = arith.constant 0 : i32
    return %c0_i32, %c0_i32_0 : i32, i32
  }
  func.func @transform_2(%arg0: i32) -> (i32, i32) {
    %c0_i32 = arith.constant 0 : i32
    %c0_i32_0 = arith.constant 0 : i32
    %c0_i32_1 = arith.constant 0 : i32
    return %c0_i32, %c0_i32_0 : i32, i32
  }
  func.func @transform_3(%arg0: i32) -> (i32, i32) {
    %c0_i32 = arith.constant 0 : i32
    %c0_i32_0 = arith.constant 0 : i32
    %c0_i32_1 = arith.constant 0 : i32
    return %c0_i32, %c0_i32_0 : i32, i32
  }
  func.func @transform_4(%arg0: i32) -> (i32, i32) {
    %c0_i32 = arith.constant 0 : i32
    %c0_i32_0 = arith.constant 0 : i32
    %c0_i32_1 = arith.constant 0 : i32
    return %c0_i32, %c0_i32_0 : i32, i32
  }
  func.func @transform_5(%arg0: i32) -> (i32, i32) {
    %c0_i32 = arith.constant 0 : i32
    %c0_i32_0 = arith.constant 0 : i32
    %c0_i32_1 = arith.constant 0 : i32
    return %c0_i32, %c0_i32_0 : i32, i32
  }
  func.func @transform_6(%arg0: i32) -> (i32, i32) {
    %c0_i32 = arith.constant 0 : i32
    %c0_i32_0 = arith.constant 0 : i32
    %c0_i32_1 = arith.constant 0 : i32
    return %c0_i32, %c0_i32_0 : i32, i32
  }
  func.func @transform_7(%arg0: i32) -> (i32, i32) {
    %c0_i32 = arith.constant 0 : i32
    %c0_i32_0 = arith.constant 0 : i32
    return %arg0, %c0_i32 : i32, i32
  }
}

</mosaic_0001>

<bundles_post_ra>
// kernel: mlp_forward.1
= control target key start
LH: loop header
LB: loop body
LE: loop exit
PB: predicated region body
PF: predicated region fallthrough
CT: control target
= control target key end

     0   :  { %v1218_v39 = vmov 0.0   ;;  %vm1219_vm0 = vmmov 0   ;;  %s1530_s1 = inlined_call_operand.vmem [shape: bf16[896,128], index: 1, kind: input, shape index: {}]   ;;  %s1531_s0 = inlined_call_operand.vmem [shape: bf16[8,896], index: 0, kind: input, shape index: {}]   ;;  %s1532_s3 = inlined_call_operand.vmem [shape: bf16[128,128], index: 3, kind: input, shape index: {}]   ;;  %s1533_s5 = inlined_call_operand.vmem [shape: bf16[128,128], index: 5, kind: input, shape index: {}]   ;;  %s1534_s2 = inlined_call_operand.vmem [shape: f32[1,128], index: 2, kind: input, shape index: {}]   ;;  %s1535_s4 = inlined_call_operand.vmem [shape: f32[1,128], index: 4, kind: input, shape index: {}]   ;;  %s1536_s6 = inlined_call_operand.vmem [shape: f32[1,128], index: 6, kind: input, shape index: {}]   ;;  %s1537_s7 = inlined_call_operand.vmem [shape: f32[8,128], index: 7, kind: output, shape index: {}]  }
   0x1   :  { %v1139_v0 = vld [vmem:[%s1530_s1 + $0x78] sm:$0xff]   ;;  %v1143_v4 = vld [vmem:[%s1530_s1 + $0x70] sm:$0xff]   ;;  %v1147_v8 = vld [vmem:[%s1530_s1 + $0x68] sm:$0xff]  }
   0x2   :  { %v1140_v1 = vld [vmem:[%s1530_s1 + $0xf8] sm:$0xff]   ;;  %984 = vmatprep.subr.bf16.mxu0 %v1139_v0  ;;  %v1144_v5 = vld [vmem:[%s1530_s1 + $0xf0] sm:$0xff]   ;;  %v1148_v9 = vld [vmem:[%s1530_s1 + $0xe8] sm:$0xff]  }
   0x3   :  { %v1141_v2 = vld [vmem:[%s1530_s1 + $0x38] sm:$0xff]   ;;  %1006 = vmatprep.subr.bf16.mxu1 %v1140_v1  ;;  %v1145_v6 = vld [vmem:[%s1530_s1 + $0x30] sm:$0xff]   ;;  %v1149_v10 = vld [vmem:[%s1530_s1 + $0x28] sm:$0xff]  }
   0x4   :  { %v1142_v3 = vld [vmem:[%s1530_s1 + $0xb8] sm:$0xff]   ;;  %985 = vmatpush3.bf16.msra.mxu0 %v1141_v2  ;;  %v1146_v7 = vld [vmem:[%s1530_s1 + $0xb0] sm:$0xff]   ;;  %v1150_v11 = vld [vmem:[%s1530_s1 + $0xa8] sm:$0xff]  }
   0x5   :  { %1007 = vmatpush3.bf16.msra.mxu1 %v1142_v3  ;;  %986 = vmatprep.subr.bf16.mxu0 %v1143_v4  ;;  %v1151_v12 = vld [vmem:[%s1530_s1 + $0x60] sm:$0xff]   ;;  %v1155_v16 = vld [vmem:[%s1530_s1 + $0x58] sm:$0xff]   ;;  %v1159_v20 = vld [vmem:[%s1530_s1 + $0x50] sm:$0xff]  }
   0x6   :  { %1008 = vmatprep.subr.bf16.mxu1 %v1144_v5  ;;  %v1152_v13 = vld [vmem:[%s1530_s1 + $0xe0] sm:$0xff]   ;;  %v1156_v17 = vld [vmem:[%s1530_s1 + $0xd8] sm:$0xff]   ;;  %v1160_v21 = vld [vmem:[%s1530_s1 + $0xd0] sm:$0xff]  }
   0x7   :  { %v1153_v14 = vld [vmem:[%s1530_s1 + $0x20] sm:$0xff]   ;;  %v1157_v18 = vld [vmem:[%s1530_s1 + $0x18] sm:$0xff]   ;;  %v1161_v22 = vld [vmem:[%s1530_s1 + $0x10] sm:$0xff]  }
   0x8   :  { %987 = vmatpush3.bf16.msra.mxu0 %v1145_v6  ;;  %v1154_v15 = vld [vmem:[%s1530_s1 + $0xa0] sm:$0xff]   ;;  %v1158_v19 = vld [vmem:[%s1530_s1 + $0x98] sm:$0xff]   ;;  %v1162_v23 = vld [vmem:[%s1530_s1 + $0x90] sm:$0xff]  }
   0x9   :  { %1009 = vmatpush3.bf16.msra.mxu1 %v1146_v7  ;;  %988 = vmatprep.subr.bf16.mxu0 %v1147_v8  ;;  %v1163_v24 = vld [vmem:[%s1530_s1 + $0x48] sm:$0xff]   ;;  %v1167_v28 = vld [vmem:[%s1530_s1 + $0x40] sm:$0xff]   ;;  %v1175_v38 = vld [vmem:[%s1530_s1 + $0x178] sm:$0xff]  }
   0xa   :  { %1010 = vmatprep.subr.bf16.mxu1 %v1148_v9  ;;  %v1164_v25 = vld [vmem:[%s1530_s1 + $0xc8] sm:$0xff]   ;;  %v1168_v29 = vld [vmem:[%s1530_s1 + $0xc0] sm:$0xff]   ;;  %v1176_v40 = vld [vmem:[%s1530_s1 + $0x138] sm:$0xff]  }
   0xb   :  { %v1165_v26 = vld [vmem:[%s1530_s1 + $0x8] sm:$0xff]   ;;  %v1169_v30 = vld [vmem:[%s1530_s1] sm:$0xff]   ;;  %v1177_v41 = vld [vmem:[%s1530_s1 + $0x1b8] sm:$0xff]  }
   0xc   :  { %989 = vmatpush3.bf16.msra.mxu0 %v1149_v10  ;;  %v1166_v27 = vld [vmem:[%s1530_s1 + $0x88] sm:$0xff]   ;;  %v1170_v31 = vld [vmem:[%s1530_s1 + $0x80] sm:$0xff]   ;;  %v1178_v42 = vld [vmem:[%s1530_s1 + $0x170] sm:$0xff]  }
   0xd   :  { %1011 = vmatpush3.bf16.msra.mxu1 %v1150_v11  ;;  %990 = vmatprep.subr.bf16.mxu0 %v1151_v12  ;;  %v27_v32 = vld [vmem:[%s1531_s0] sm:$0xff]  ;;  %v28_v33 = vld [vmem:[%s1531_s0 + $0x8] sm:$0xff]  ;;  %v1179_v43 = vld [vmem:[%s1530_s1 + $0x130] sm:$0xff]  }
   0xe   :  { %1012 = vmatprep.subr.bf16.mxu1 %v1152_v13  ;;  %v903_v34 = vcombine.low %v27_v32, %v27_v32  ;;  %v904_v35 = vcombine.high %v27_v32, %v27_v32  ;;  %v905_v36 = vcombine.low %v28_v33, %v28_v33  ;;  %v906_v37 = vcombine.high %v28_v33, %v28_v33  ;;  %v1180_v44 = vld [vmem:[%s1530_s1 + $0x1b0] sm:$0xff]   ;;  %v1181_v45 = vld [vmem:[%s1530_s1 + $0x168] sm:$0xff]   ;;  %v1184_v48 = vld [vmem:[%s1530_s1 + $0x160] sm:$0xff]  }
   0xf   :  { %v1182_v46 = vld [vmem:[%s1530_s1 + $0x128] sm:$0xff]   ;;  %v1185_v49 = vld [vmem:[%s1530_s1 + $0x120] sm:$0xff]   ;;  %v1187_v51 = vld [vmem:[%s1530_s1 + $0x158] sm:$0xff]  }
  0x10   :  { %991 = vmatpush3.bf16.msra.mxu0 %v1153_v14  ;;  %543 = vmatprep.mubr.bf16.mxu0 %v904_v35  ;;  %v1183_v47 = vld [vmem:[%s1530_s1 + $0x1a8] sm:$0xff]   ;;  %v1186_v50 = vld [vmem:[%s1530_s1 + $0x1a0] sm:$0xff]   ;;  %v1188_v52 = vld [vmem:[%s1530_s1 + $0x118] sm:$0xff]  }
  0x11   :  { %1013 = vmatpush3.bf16.msra.mxu1 %v1154_v15  ;;  %992 = vmatprep.subr.bf16.mxu0 %v1155_v16  ;;  %v1189_v53 = vld [vmem:[%s1530_s1 + $0x198] sm:$0xff]   ;;  %v1190_v54 = vld [vmem:[%s1530_s1 + $0x150] sm:$0xff]   ;;  %v1193_v57 = vld [vmem:[%s1530_s1 + $0x148] sm:$0xff]  }
  0x12   :  { %1014 = vmatprep.subr.bf16.mxu1 %v1156_v17  ;;  %583 = vmatprep.mubr.bf16.mxu1 %v906_v37  ;;  %v1191_v55 = vld [vmem:[%s1530_s1 + $0x110] sm:$0xff]   ;;  %v1194_v59 = vld [vmem:[%s1530_s1 + $0x108] sm:$0xff]   ;;  %v1196_v62 = vld [vmem:[%s1530_s1 + $0x140] sm:$0xff]  }
  0x13   :  { %v1192_v56 = vld [vmem:[%s1530_s1 + $0x190] sm:$0xff]   ;;  %v1195_v61 = vld [vmem:[%s1530_s1 + $0x188] sm:$0xff]   ;;  %v1197_v63 = vld [vmem:[%s1530_s1 + $0x100] sm:$0xff]  }
  0x14   :  { %993 = vmatpush3.bf16.msra.mxu0 %v1157_v18  ;;  %v29_v58 = vld [vmem:[%s1531_s0 + $0x10] sm:$0xff]  ;;  %v1198_v0 = vld [vmem:[%s1530_s1 + $0x180] sm:$0xff]   ;;  %v1201_v2 = vld [vmem:[%s1531_s0 + $0x18] ss:$0 sps:$4 sm:$0xff]  }
  0x15   :  { %1015 = vmatpush3.bf16.msra.mxu1 %v1158_v19  ;;  %994 = vmatprep.subr.bf16.mxu0 %v1159_v20  ;;  %v908_v60 = vcombine.high %v29_v58, %v29_v58  ;;  %v907_v1 = vcombine.low %v29_v58, %v29_v58  ;;  %v1202_v3 = vld [vmem:[%s1532_s3 + $0x38] sm:$0xff]   ;;  %v1203_v4 = vld [vmem:[%s1532_s3 + $0x30] sm:$0xff]   ;;  %v1204_v5 = vld [vmem:[%s1532_s3 + $0x28] sm:$0xff]  }
  0x16   :  { %1016 = vmatprep.subr.bf16.mxu1 %v1160_v21  ;;  %v1205_v6 = vld [vmem:[%s1532_s3 + $0x20] sm:$0xff]   ;;  %v1206_v7 = vld [vmem:[%s1532_s3 + $0x18] sm:$0xff]   ;;  %v1207_v8 = vld [vmem:[%s1532_s3 + $0x10] sm:$0xff]  }
  0x17   :  { %v1208_v9 = vld [vmem:[%s1532_s3 + $0x8] sm:$0xff]   ;;  %v1209_v10 = vld [vmem:[%s1532_s3] sm:$0xff]   ;;  %v1210_v11 = vld [vmem:[%s1533_s5 + $0x38] sm:$0xff]  }
  0x18   :  { %995 = vmatpush3.bf16.msra.mxu0 %v1161_v22  ;;  %v1211_v12 = vld [vmem:[%s1533_s5 + $0x30] sm:$0xff]   ;;  %v1212_v13 = vld [vmem:[%s1533_s5 + $0x28] sm:$0xff]   ;;  %v1213_v14 = vld [vmem:[%s1533_s5 + $0x20] sm:$0xff]  }
  0x19   :  { %1017 = vmatpush3.bf16.msra.mxu1 %v1162_v23  ;;  %996 = vmatprep.subr.bf16.mxu0 %v1163_v24  ;;  %v1214_v15 = vld [vmem:[%s1533_s5 + $0x18] sm:$0xff]   ;;  %v1215_v16 = vld [vmem:[%s1533_s5 + $0x10] sm:$0xff]  }
  0x1a   :  { %1018 = vmatprep.subr.bf16.mxu1 %v1164_v25 }
  0x1c   :  { %997 = vmatpush3.bf16.msra.mxu0 %v1165_v26  ;;  %v902_v26 = vld [vmem:[%s1534_s2] ss:$0 sm:$0xff] }
  0x1d   :  { %1019 = vmatpush3.bf16.msra.mxu1 %v1166_v27  ;;  %998 = vmatprep.subr.bf16.mxu0 %v1167_v28 }
  0x1e   :  { %1020 = vmatprep.subr.bf16.mxu1 %v1168_v29 }
  0x20   :  { %999 = vmatpush3.bf16.msra.mxu0 %v1169_v30 }
  0x21   :  { %1021 = vmatpush3.bf16.msra.mxu1 %v1170_v31  ;;  %1028 = vmatprep.subr.bf16.mxu0 %v1175_v38 }
  0x22   :  { %1077 = vmatprep.subr.bf16.mxu1 %v1218_v39 }
  0x23   :  { %544 = vmatmul.mubr.bf16.vlgmr.msra.gmra.mxu0 %v903_v34 }
  0x24   :  { %584 = vmatmul.mubr.bf16.vlgmr.msra.gmra.mxu1 %v905_v36  ;;  %1029 = vmatpush3.bf16.msra.mxu0 %v1176_v40 }
  0x25   :  { %1078 = vmatpush3.bf16.msra.mxu1 %v1177_v41  ;;  %1030 = vmatprep.subr.bf16.mxu0 %v1178_v42 }
  0x26   :  { %1079 = vmatprep.subr.bf16.mxu1 %v1218_v39  ;;  %1093 = vmatprep.mubr.msk.bf16.mxu1 %vm1219_vm0, %v1218_v39 }
  0x27   :  { %623 = vmatprep.mubr.bf16.mxu0 %v908_v60 }
  0x28   :  { %1031 = vmatpush3.bf16.msra.mxu0 %v1179_v43 }
  0x29   :  { %1080 = vmatpush3.bf16.msra.mxu1 %v1180_v44  ;;  %1032 = vmatprep.subr.bf16.mxu0 %v1181_v45  ;;  %v1216_v44 = vld [vmem:[%s1533_s5 + $0x8] sm:$0xff]   ;;  %v1217_v45 = vld [vmem:[%s1533_s5] sm:$0xff]  }
  0x2a   :  { %1081 = vmatprep.subr.bf16.mxu1 %v1218_v39 }
  0x2c   :  { %1033 = vmatpush3.bf16.msra.mxu0 %v1182_v46  ;;  %v966_v46 = vld [vmem:[%s1535_s4] ss:$0 sm:$0xff] }
  0x2d   :  { %1082 = vmatpush3.bf16.msra.mxu1 %v1183_v47  ;;  %1034 = vmatprep.subr.bf16.mxu0 %v1184_v48 }
  0x2e   :  { %1083 = vmatprep.subr.bf16.mxu1 %v1218_v39 }
  0x30   :  { %1035 = vmatpush3.bf16.msra.mxu0 %v1185_v49 }
  0x31   :  { %1084 = vmatpush3.bf16.msra.mxu1 %v1186_v50  ;;  %1036 = vmatprep.subr.bf16.mxu0 %v1187_v51 }
  0x32   :  { %1085 = vmatprep.subr.bf16.mxu1 %v1218_v39 }
  0x34   :  { %1037 = vmatpush3.bf16.msra.mxu0 %v1188_v52 }
  0x35   :  { %1086 = vmatpush3.bf16.msra.mxu1 %v1189_v53  ;;  %1038 = vmatprep.subr.bf16.mxu0 %v1190_v54 }
  0x36   :  { %1087 = vmatprep.subr.bf16.mxu1 %v1218_v39 }
  0x38   :  { %1039 = vmatpush3.bf16.msra.mxu0 %v1191_v55 }
  0x39   :  { %1088 = vmatpush3.bf16.msra.mxu1 %v1192_v56  ;;  %1040 = vmatprep.subr.bf16.mxu0 %v1193_v57 }
  0x3a   :  { %1089 = vmatprep.subr.bf16.mxu1 %v1218_v39 }
  0x3c   :  { %1041 = vmatpush3.bf16.msra.mxu0 %v1194_v59 }
  0x3d   :  { %1090 = vmatpush3.bf16.msra.mxu1 %v1195_v61  ;;  %1042 = vmatprep.subr.bf16.mxu0 %v1196_v62 }
  0x3e   :  { %1091 = vmatprep.subr.bf16.mxu1 %v1218_v39 }
  0x40   :  { %1043 = vmatpush3.bf16.msra.mxu0 %v1197_v63 }
  0x41   :  { %1092 = vmatpush3.bf16.msra.mxu1 %v1198_v0  ;;  %1097 = vmatprep.subr.bf16.mxu0 %v1218_v39 }
  0x42   :  { %1117 = vmatprep.subr.bf16.mxu1 %v1218_v39 }
  0x43   :  { %624 = vmatmul.mubr.bf16.vlgmr.msra.gmra.mxu0 %v907_v1 }
  0x44   :  { %1094 = vmatmul.mubr.bf16.vlgmr.msra.gmra.mxu1 %v1201_v2  ;;  %1113 = vmatprep.mubr.msk.bf16.mxu0 %vm1219_vm0, %v1218_v39 }
  0x45   :  { %1133 = vmatprep.mubr.msk.bf16.mxu1 %vm1219_vm0, %v1218_v39  ;;  %1098 = vmatpush3.bf16.msra.mxu0 %v1202_v3 }
  0x46   :  { %1099 = vmatprep.subr.bf16.mxu0 %v1218_v39  ;;  %1118 = vmatpush3.bf16.msra.mxu1 %v1210_v11 }
  0x47   :  { %1119 = vmatprep.subr.bf16.mxu1 %v1218_v39 }
  0x49   :  { %1100 = vmatpush3.bf16.msra.mxu0 %v1203_v4 }
  0x4a   :  { %1101 = vmatprep.subr.bf16.mxu0 %v1218_v39  ;;  %1120 = vmatpush3.bf16.msra.mxu1 %v1211_v12 }
  0x4b   :  { %1121 = vmatprep.subr.bf16.mxu1 %v1218_v39 }
  0x4d   :  { %1102 = vmatpush3.bf16.msra.mxu0 %v1204_v5 }
  0x4e   :  { %1103 = vmatprep.subr.bf16.mxu0 %v1218_v39  ;;  %1122 = vmatpush3.bf16.msra.mxu1 %v1212_v13 }
  0x4f   :  { %1123 = vmatprep.subr.bf16.mxu1 %v1218_v39 }
  0x51   :  { %1104 = vmatpush3.bf16.msra.mxu0 %v1205_v6 }
  0x52   :  { %1105 = vmatprep.subr.bf16.mxu0 %v1218_v39  ;;  %1124 = vmatpush3.bf16.msra.mxu1 %v1213_v14 }
  0x53   :  { %1125 = vmatprep.subr.bf16.mxu1 %v1218_v39 }
  0x55   :  { %1106 = vmatpush3.bf16.msra.mxu0 %v1206_v7 }
  0x56   :  { %1107 = vmatprep.subr.bf16.mxu0 %v1218_v39  ;;  %1126 = vmatpush3.bf16.msra.mxu1 %v1214_v15 }
  0x57   :  { %1127 = vmatprep.subr.bf16.mxu1 %v1218_v39 }
  0x59   :  { %1108 = vmatpush3.bf16.msra.mxu0 %v1207_v8 }
  0x5a   :  { %1109 = vmatprep.subr.bf16.mxu0 %v1218_v39  ;;  %1128 = vmatpush3.bf16.msra.mxu1 %v1215_v16 }
  0x5b   :  { %1129 = vmatprep.subr.bf16.mxu1 %v1218_v39 }
  0x5d   :  { %1110 = vmatpush3.bf16.msra.mxu0 %v1208_v9 }
  0x5e   :  { %1111 = vmatprep.subr.bf16.mxu0 %v1218_v39  ;;  %1130 = vmatpush3.bf16.msra.mxu1 %v1216_v44 }
  0x5f   :  { %1131 = vmatprep.subr.bf16.mxu1 %v1218_v39  ;;  %v975_v39 = vld [vmem:[%s1536_s6] ss:$0 sm:$0xff] }
  0x61   :  { %1112 = vmatpush3.bf16.msra.mxu0 %v1209_v10 }
  0x62   :  { %1132 = vmatpush3.bf16.msra.mxu1 %v1217_v45 }
  0xe3   :  { %v1000_v17 = vpop.f32.mrf.mxu0 }
  0xe4   :  { %v1022_v18 = vpop.f32.mrf.mxu1 }
  0xe5   :  { %v1001_v19 = vpop.f32.mrf.mxu0 }
  0xe6   :  { %v1023_v20 = vpop.f32.mrf.mxu1  ;;  %v1002_v25 = vadd.f32 %v1001_v19, %v1000_v17 }
  0xe7   :  { %v1003_v21 = vpop.f32.mrf.mxu0  ;;  %v1024_v28 = vadd.f32 %v1023_v20, %v1022_v18 }
  0xe8   :  { %v1025_v22 = vpop.f32.mrf.mxu1  ;;  %v546_v27 = vadd.f32 %v1002_v25, %v902_v26 }
  0xe9   :  { %v1004_v23 = vpop.f32.mrf.mxu0 }
  0xea   :  { %v1026_v24 = vpop.f32.mrf.mxu1  ;;  %v586_v32 = vadd.f32 %v1024_v28, %v546_v27 }
 0x103   :  { %v1044_v29 = vpop.f32.mrf.mxu0 }
 0x104   :  { %v665_v30 = vpop.f32.mrf.mxu1 }
 0x105   :  { %v1045_v31 = vpop.f32.mrf.mxu0 }
 0x106   :  { %v1046_v33 = vadd.f32 %v1045_v31, %v1044_v29  ;;  %v1095_v34 = vpop.f32.mrf.mxu1 }
 0x107   :  { %v1047_v35 = vpop.f32.mrf.mxu0 }
 0x108   :  { %v626_v36 = vadd.f32 %v1046_v33, %v586_v32  ;;  %v668_v37 = vpop.f32.mrf.mxu1 }
 0x109   :  { %v1048_v38 = vpop.f32.mrf.mxu0 }
 0x10a   :  { %v666_v40 = vadd.f32 %v665_v30, %v626_v36  ;;  %v1096_v41 = vpop.f32.mrf.mxu1 }
 0x10c   :  { %v671_v42 = vmax.f32 %v666_v40, 0.0 }
 0x10e   :  { %v672_v43 = vpack.c.bf16 %v671_v42, %v671_v42 }
 0x110   :  { %1114 = vmatmul.mubr.bf16.vlgmr.msra.gmra.mxu0 %v672_v43 }
 0x1d0   :  { %v778_v47 = vpop.f32.mrf.mxu0 }
 0x1d1   :  { %v779_v48 = vadd.f32 %v966_v46, %v778_v47 }
 0x1d2   :  { %v1115_v49 = vpop.f32.mrf.mxu0 }
 0x1d3   :  { %v784_v50 = vmax.f32 %v779_v48, 0.0 }
 0x1d4   :  { %v781_v51 = vpop.f32.mrf.mxu0 }
 0x1d5   :  { %v785_v52 = vpack.c.bf16 %v784_v50, %v784_v50 }
 0x1d6   :  { %v1116_v53 = vpop.f32.mrf.mxu0 }
 0x1d7   :  { %1134 = vmatmul.mubr.bf16.vlgmr.msra.gmra.mxu1 %v785_v52 }
 0x297   :  { %v891_v54 = vpop.f32.mrf.mxu1 }
 0x298   :  { %v892_v55 = vadd.f32 %v975_v39, %v891_v54 }
 0x299   :  { %v1135_v56 = vpop.f32.mrf.mxu1 }
 0x29a   :  { %897 = vst [vmem:[%s1537_s7] sm:$0xff] %v892_v55 }
 0x29b   :  { %v894_v57 = vpop.f32.mrf.mxu1 }
 0x29d   :  { %v1136_v58 = vpop.f32.mrf.mxu1 }

</bundles_post_ra>
